<compile_context>
chip_gen: v7x
topology: tpu7x:2x2x1
jax: 0.10.0
libtpu: 0.0.40
codegen_flags: <defaults>
</compile_context>

<pallas_src>
import functools

import jax
import jax.numpy as jnp
from jax.experimental import pallas as pl
from jax.experimental.pallas import tpu as pltpu

_EPS = 1e-6
_LANE = 128


def _sublane_multiple(*dtypes):
    """Required multiple for the second-minor block dim, per dtype packing."""
    mult = 8
    for dt in dtypes:
        itemsize = max(jnp.dtype(dt).itemsize, 1)
        mult = max(mult, 8 * (4 // itemsize))   # f32->8, bf16->16, int8/bool->32
    return mult


def _dice_partials_kernel(x_ref, t_ref, inter_ref, denom_ref, *,
                          num_rows, tile_rows, acc_rows, k_per_group):
    """Grid = (batch, row-group [parallel], row-tile [reduction, last]).

    x_ref, t_ref : (C, tile_rows, 128) tiles of logits / targets (one batch)
    inter_ref    : (C, acc_rows, 128) resident accumulator of sum(sig(x)*t)
    denom_ref    : (C, acc_rows, 128) resident accumulator of sum(sig(x)^2+t^2)
    """
    p = pl.program_id(1)
    k = pl.program_id(2)

    @pl.when(k == 0)
    def _():
        inter_ref[...] = jnp.zeros_like(inter_ref)
        denom_ref[...] = jnp.zeros_like(denom_ref)

    x = x_ref[...].astype(jnp.float32)
    t = t_ref[...].astype(jnp.float32)
    # normalization = 'sigmoid' (default); single EUP tanh per element,
    # mathematically identical to 1/(1+exp(-x)).
    sx = 0.5 * (1.0 + jnp.tanh(0.5 * x))

    inter = sx * t
    denom = sx * sx + t * t

    c = inter.shape[0]

    def _reduce_tile(a):
        # (C, tile_rows, 128) -> (C, acc_rows, 128): pure vreg-wise VPU adds
        # (reshape splits at sublane-group boundaries -> free relayout).
        return jnp.sum(
            a.reshape(c, tile_rows // acc_rows, acc_rows, _LANE), axis=1)

    def _accumulate(mask):
        i, d = inter, denom
        if mask is not None:
            # select discards any NaN/garbage from padded out-of-bounds rows
            i = jnp.where(mask, i, 0.0)
            d = jnp.where(mask, d, 0.0)
        inter_ref[...] += _reduce_tile(i)
        denom_ref[...] += _reduce_tile(d)

    if num_rows % tile_rows != 0:
        # Only the globally-last tile is partial; keep masking off the
        # steady-state path.
        is_tail = jnp.logical_and(p == pl.num_programs(1) - 1,
                                  k == pl.num_programs(2) - 1)

        @pl.when(is_tail)
        def _():
            row = jax.lax.broadcasted_iota(jnp.int32, inter.shape, dimension=1)
            global_row = (p * k_per_group + k) * tile_rows + row
            _accumulate(global_row < num_rows)

        @pl.when(jnp.logical_not(is_tail))
        def _():
            _accumulate(None)
    else:
        _accumulate(None)


@jax.jit
def dice_loss(x_nchw, t_nchw):
    """Forward of _AbstractDiceLoss (sigmoid normalization, weight=None)."""
    B, C, H, W = x_nchw.shape
    HW = H * W
    # TODO(synk): general (non 128-multiple) spatial sizes would need a padded
    # lane dimension with in-kernel lane masking; not required for this demo.
    assert HW % _LANE == 0, "H*W must be a multiple of 128"
    num_rows = HW // _LANE

    # Free (contiguous, no-transpose) reshape: the kernel reads NCHW data in
    # its native HBM layout — exactly one HBM pass per tensor.
    x = x_nchw.reshape(B, C, num_rows, _LANE)
    t = t_nchw.reshape(B, C, num_rows, _LANE)

    isx = jnp.dtype(x.dtype).itemsize
    ist = jnp.dtype(t.dtype).itemsize
    sub_mult = _sublane_multiple(x.dtype, t.dtype)

    # --- tile sizing: ~2 MiB per input block (HBM-roofline sweet spot),
    #     double-buffered inputs kept under a ~24 MiB VMEM budget.
    target_block_bytes = 2 << 20
    input_budget_bytes = 24 << 20
    rows_target = max(target_block_bytes // (C * _LANE * max(isx, ist)), 1)
    rows_budget = max(input_budget_bytes // (2 * 2 * C * _LANE * (isx + ist)), 1)
    cand = max(min(rows_target, rows_budget), sub_mult)
    cand = (cand // sub_mult) * sub_mult
    tile_rows = num_rows if cand >= num_rows else cand
    acc_rows = 8 if tile_rows % 8 == 0 else tile_rows

    num_k_total = pl.cdiv(num_rows, tile_rows)
    # 2-way parallel row split keeps both v7x TensorCores busy when B is small;
    # a no-op on single-TC v5e/v6e.
    P = 2 if (num_k_total >= 2 and num_k_total % 2 == 0) else 1
    K = num_k_total // P

    resident_bytes = (2 * 2 * C * tile_rows * _LANE * (isx + ist)
                      + 2 * 2 * C * acc_rows * _LANE * 4)
    vmem_limit = min(max(resident_bytes + (4 << 20), 32 << 20), 48 << 20)

    kernel = functools.partial(
        _dice_partials_kernel, num_rows=num_rows, tile_rows=tile_rows,
        acc_rows=acc_rows, k_per_group=K)

    n_elem = B * C * HW
    cost = pl.CostEstimate(
        flops=6 * n_elem,
        transcendentals=n_elem,
        bytes_accessed=n_elem * (isx + ist) + 2 * B * P * C * acc_rows * _LANE * 4)

    in_map = lambda b, p, k: (b, 0, p * K + k, 0)
    out_map = lambda b, p, k: (b, p, 0, 0, 0)

    inter_p, denom_p = pl.pallas_call(
        kernel,
        out_shape=(
            jax.ShapeDtypeStruct((B, P, C, acc_rows, _LANE), jnp.float32),
            jax.ShapeDtypeStruct((B, P, C, acc_rows, _LANE), jnp.float32),
        ),
        grid_spec=pltpu.PrefetchScalarGridSpec(
            num_scalar_prefetch=0,
            grid=(B, P, K),
            in_specs=[
                pl.BlockSpec((None, C, tile_rows, _LANE), in_map),
                pl.BlockSpec((None, C, tile_rows, _LANE), in_map),
            ],
            out_specs=[
                pl.BlockSpec((None, None, C, acc_rows, _LANE), out_map),
                pl.BlockSpec((None, None, C, acc_rows, _LANE), out_map),
            ],
        ),
        compiler_params=pltpu.CompilerParams(
            dimension_semantics=("parallel", "parallel", "arbitrary"),
            vmem_limit_bytes=vmem_limit,
        ),
        cost_estimate=cost,
    )(x, t)

    # Tiny JAX epilogue: combine per-batch / per-group / per-sublane / per-lane
    # partials, then the dice ratio and channel mean.
    inter = jnp.sum(inter_p, axis=(0, 1, 3, 4))   # (C,)
    denom = jnp.sum(denom_p, axis=(0, 1, 3, 4))   # (C,)
    # TODO(synk): self.weight buffer is None by default; if provided it would
    # multiply `inter` per-channel before the division.
    dice = 2.0 * inter / jnp.maximum(denom, _EPS)
    return 1.0 - jnp.mean(dice)


def _reference(x_nchw, t_nchw):
    # pure-JAX reference of the same forward pass (torch-style channel flatten)
    C = x_nchw.shape[1]
    x = jnp.transpose(x_nchw, (1, 0, 2, 3)).reshape(C, -1).astype(jnp.float32)
    t = jnp.transpose(t_nchw, (1, 0, 2, 3)).reshape(C, -1).astype(jnp.float32)
    sx = jax.nn.sigmoid(x)
    inter = jnp.sum(sx * t, axis=-1)
    denom = jnp.sum(sx * sx, axis=-1) + jnp.sum(t * t, axis=-1)
    dice = 2.0 * inter / jnp.maximum(denom, _EPS)
    return 1.0 - jnp.mean(dice)


if __name__ == "__main__":
    key = jax.random.PRNGKey(0)
    k1, k2, k3, k4, k5, k6 = jax.random.split(key, 6)

    # --- primary, spec-sized small test (single full-extent tile) ---
    B, C, H, W = 2, 4, 16, 16
    x = jax.random.normal(k1, (B, C, H, W), dtype=jnp.float32)        # logits
    t = (jax.random.uniform(k2, (B, C, H, W)) > 0.5).astype(jnp.float32)
    loss = dice_loss(x, t)
    jax.block_until_ready(loss)
    ref = _reference(x, t)
    assert jnp.allclose(loss, ref, atol=1e-4, rtol=1e-4), (loss, ref)

    # --- tiled reduction + tail mask, bf16 logits (P=1, K=3) ---
    x2 = jax.random.normal(k3, (1, 3, 548, 640), dtype=jnp.bfloat16)
    t2 = (jax.random.uniform(k4, (1, 3, 548, 640)) > 0.5).astype(jnp.float32)
    loss2 = dice_loss(x2, t2)
    jax.block_until_ready(loss2)
    ref2 = _reference(x2, t2)
    assert jnp.allclose(loss2, ref2, atol=1e-4, rtol=1e-4), (loss2, ref2)

    # --- 2-way parallel row split (P=2) + tail, int8 targets ---
    x3 = jax.random.normal(k5, (1, 5, 300, 640), dtype=jnp.float32)
    t3 = (jax.random.uniform(k6, (1, 5, 300, 640)) > 0.5).astype(jnp.int8)
    loss3 = dice_loss(x3, t3)
    jax.block_until_ready(loss3)
    ref3 = _reference(x3, t3)
    assert jnp.allclose(loss3, ref3, atol=1e-4, rtol=1e-4), (loss3, ref3)

    print("KERNEL_OK")
</pallas_src>

<mosaic_0001>
module attributes {stable_mosaic.version = 11 : i64} {
  func.func @_dice_partials_kernel(%arg0: i32, %arg1: i32, %arg2: i32, %arg3: memref<1x4x2x128xf32, #tpu.memory_space<vmem>>, %arg4: memref<1x4x2x128xf32, #tpu.memory_space<vmem>>, %arg5: memref<1x1x4x2x128xf32, #tpu.memory_space<vmem>>, %arg6: memref<1x1x4x2x128xf32, #tpu.memory_space<vmem>>) attributes {dimension_semantics = [#tpu.dimension_semantics<parallel>, #tpu.dimension_semantics<parallel>, #tpu.dimension_semantics<arbitrary>], iteration_bounds = array<i64: 2, 1, 1>, scalar_prefetch = 0 : i64, scratch_operands = 0 : i64, tpu.core_type = #tpu.core_type<tc>, window_params = [{transform_indices = @transform_0, window_bounds = array<i64: 1, 4, 2, 128>}, {transform_indices = @transform_1, window_bounds = array<i64: 1, 4, 2, 128>}, {transform_indices = @transform_2, window_bounds = array<i64: 1, 1, 4, 2, 128>}, {transform_indices = @transform_3, window_bounds = array<i64: 1, 1, 4, 2, 128>}]} {
    %c0_i32 = arith.constant 0 : i32
    %0 = arith.cmpi eq, %arg2, %c0_i32 : i32
    %1 = arith.extui %0 : i1 to i32
    %c0_i32_0 = arith.constant 0 : i32
    %2 = arith.cmpi ne, %1, %c0_i32_0 : i32
    scf.if %2 {
      %cst_32 = arith.constant 0.000000e+00 : f32
      %34 = vector.broadcast %cst_32 : f32 to vector<4x2x128xf32>
      %c0_33 = arith.constant 0 : index
      %c0_34 = arith.constant 0 : index
      %c0_35 = arith.constant 0 : index
      %c0_36 = arith.constant 0 : index
      %c0_37 = arith.constant 0 : index
      %35 = vector.load %arg5[%c0_33, %c0_34, %c0_35, %c0_36, %c0_37] : memref<1x1x4x2x128xf32, #tpu.memory_space<vmem>>, vector<1x1x4x2x128xf32>
      %36 = vector.shape_cast %35 : vector<1x1x4x2x128xf32> to vector<4x2x128xf32>
      %37 = vector.shape_cast %34 : vector<4x2x128xf32> to vector<1x1x4x2x128xf32>
      tpu.vector_store %arg5[%c0_33, %c0_34, %c0_35, %c0_36, %c0_37], %37 {strides = array<i32>} : memref<1x1x4x2x128xf32, #tpu.memory_space<vmem>>, vector<1x1x4x2x128xf32>,
      %cst_38 = arith.constant 0.000000e+00 : f32
      %38 = vector.broadcast %cst_38 : f32 to vector<4x2x128xf32>
      %c0_39 = arith.constant 0 : index
      %c0_40 = arith.constant 0 : index
      %c0_41 = arith.constant 0 : index
      %c0_42 = arith.constant 0 : index
      %c0_43 = arith.constant 0 : index
      %39 = vector.load %arg6[%c0_39, %c0_40, %c0_41, %c0_42, %c0_43] : memref<1x1x4x2x128xf32, #tpu.memory_space<vmem>>, vector<1x1x4x2x128xf32>
      %40 = vector.shape_cast %39 : vector<1x1x4x2x128xf32> to vector<4x2x128xf32>
      %41 = vector.shape_cast %38 : vector<4x2x128xf32> to vector<1x1x4x2x128xf32>
      tpu.vector_store %arg6[%c0_39, %c0_40, %c0_41, %c0_42, %c0_43], %41 {strides = array<i32>} : memref<1x1x4x2x128xf32, #tpu.memory_space<vmem>>, vector<1x1x4x2x128xf32>,
    } else {
    }
    %c0 = arith.constant 0 : index
    %c0_1 = arith.constant 0 : index
    %c0_2 = arith.constant 0 : index
    %c0_3 = arith.constant 0 : index
    %3 = vector.load %arg3[%c0, %c0_1, %c0_2, %c0_3] : memref<1x4x2x128xf32, #tpu.memory_space<vmem>>, vector<1x4x2x128xf32>
    %4 = vector.shape_cast %3 : vector<1x4x2x128xf32> to vector<4x2x128xf32>
    %c0_4 = arith.constant 0 : index
    %c0_5 = arith.constant 0 : index
    %c0_6 = arith.constant 0 : index
    %c0_7 = arith.constant 0 : index
    %5 = vector.load %arg4[%c0_4, %c0_5, %c0_6, %c0_7] : memref<1x4x2x128xf32, #tpu.memory_space<vmem>>, vector<1x4x2x128xf32>
    %6 = vector.shape_cast %5 : vector<1x4x2x128xf32> to vector<4x2x128xf32>
    %cst = arith.constant 5.000000e-01 : f32
    %7 = vector.broadcast %cst : f32 to vector<4x2x128xf32>
    %8 = arith.mulf %7, %4 : vector<4x2x128xf32>
    %9 = math.tanh %8 : vector<4x2x128xf32>
    %cst_8 = arith.constant 1.000000e+00 : f32
    %10 = vector.broadcast %cst_8 : f32 to vector<4x2x128xf32>
    %11 = arith.addf %10, %9 : vector<4x2x128xf32>
    %cst_9 = arith.constant 5.000000e-01 : f32
    %12 = vector.broadcast %cst_9 : f32 to vector<4x2x128xf32>
    %13 = arith.mulf %12, %11 : vector<4x2x128xf32>
    %14 = arith.mulf %13, %6 : vector<4x2x128xf32>
    %15 = arith.mulf %13, %13 : vector<4x2x128xf32>
    %16 = arith.mulf %6, %6 : vector<4x2x128xf32>
    %17 = arith.addf %15, %16 : vector<4x2x128xf32>
    %c0_10 = arith.constant 0 : index
    %c0_11 = arith.constant 0 : index
    %c0_12 = arith.constant 0 : index
    %c0_13 = arith.constant 0 : index
    %c0_14 = arith.constant 0 : index
    %18 = vector.load %arg5[%c0_10, %c0_11, %c0_12, %c0_13, %c0_14] : memref<1x1x4x2x128xf32, #tpu.memory_space<vmem>>, vector<1x1x4x2x128xf32>
    %19 = vector.shape_cast %18 : vector<1x1x4x2x128xf32> to vector<4x2x128xf32>
    %20 = vector.shape_cast %14 : vector<4x2x128xf32> to vector<4x1x2x128xf32>
    %cst_15 = arith.constant dense<0.000000e+00> : vector<4x2x128xf32>
    %21 = vector.multi_reduction <add>, %20, %cst_15 [1] : vector<4x1x2x128xf32> to vector<4x2x128xf32>
    %22 = arith.addf %19, %21 : vector<4x2x128xf32>
    %c0_16 = arith.constant 0 : index
    %c0_17 = arith.constant 0 : index
    %c0_18 = arith.constant 0 : index
    %c0_19 = arith.constant 0 : index
    %c0_20 = arith.constant 0 : index
    %23 = vector.load %arg5[%c0_16, %c0_17, %c0_18, %c0_19, %c0_20] : memref<1x1x4x2x128xf32, #tpu.memory_space<vmem>>, vector<1x1x4x2x128xf32>
    %24 = vector.shape_cast %23 : vector<1x1x4x2x128xf32> to vector<4x2x128xf32>
    %25 = vector.shape_cast %22 : vector<4x2x128xf32> to vector<1x1x4x2x128xf32>
    tpu.vector_store %arg5[%c0_16, %c0_17, %c0_18, %c0_19, %c0_20], %25 {strides = array<i32>} : memref<1x1x4x2x128xf32, #tpu.memory_space<vmem>>, vector<1x1x4x2x128xf32>,
    %c0_21 = arith.constant 0 : index
    %c0_22 = arith.constant 0 : index
    %c0_23 = arith.constant 0 : index
    %c0_24 = arith.constant 0 : index
    %c0_25 = arith.constant 0 : index
    %26 = vector.load %arg6[%c0_21, %c0_22, %c0_23, %c0_24, %c0_25] : memref<1x1x4x2x128xf32, #tpu.memory_space<vmem>>, vector<1x1x4x2x128xf32>
    %27 = vector.shape_cast %26 : vector<1x1x4x2x128xf32> to vector<4x2x128xf32>
    %28 = vector.shape_cast %17 : vector<4x2x128xf32> to vector<4x1x2x128xf32>
    %cst_26 = arith.constant dense<0.000000e+00> : vector<4x2x128xf32>
    %29 = vector.multi_reduction <add>, %28, %cst_26 [1] : vector<4x1x2x128xf32> to vector<4x2x128xf32>
    %30 = arith.addf %27, %29 : vector<4x2x128xf32>
    %c0_27 = arith.constant 0 : index
    %c0_28 = arith.constant 0 : index
    %c0_29 = arith.constant 0 : index
    %c0_30 = arith.constant 0 : index
    %c0_31 = arith.constant 0 : index
    %31 = vector.load %arg6[%c0_27, %c0_28, %c0_29, %c0_30, %c0_31] : memref<1x1x4x2x128xf32, #tpu.memory_space<vmem>>, vector<1x1x4x2x128xf32>
    %32 = vector.shape_cast %31 : vector<1x1x4x2x128xf32> to vector<4x2x128xf32>
    %33 = vector.shape_cast %30 : vector<4x2x128xf32> to vector<1x1x4x2x128xf32>
    tpu.vector_store %arg6[%c0_27, %c0_28, %c0_29, %c0_30, %c0_31], %33 {strides = array<i32>} : memref<1x1x4x2x128xf32, #tpu.memory_space<vmem>>, vector<1x1x4x2x128xf32>,
    return
  }
  func.func @transform_0(%arg0: i32, %arg1: i32, %arg2: i32) -> (i32, i32, i32, i32) {
    %c1_i32 = arith.constant 1 : i32
    %0 = arith.muli %arg1, %c1_i32 : i32
    %1 = arith.addi %0, %arg2 : i32
    %c0_i32 = arith.constant 0 : i32
    %c0_i32_0 = arith.constant 0 : i32
    %c0_i32_1 = arith.constant 0 : i32
    return %arg0, %c0_i32, %1, %c0_i32_0 : i32, i32, i32, i32
  }
  func.func @transform_1(%arg0: i32, %arg1: i32, %arg2: i32) -> (i32, i32, i32, i32) {
    %c1_i32 = arith.constant 1 : i32
    %0 = arith.muli %arg1, %c1_i32 : i32
    %1 = arith.addi %0, %arg2 : i32
    %c0_i32 = arith.constant 0 : i32
    %c0_i32_0 = arith.constant 0 : i32
    %c0_i32_1 = arith.constant 0 : i32
    return %arg0, %c0_i32, %1, %c0_i32_0 : i32, i32, i32, i32
  }
  func.func @transform_2(%arg0: i32, %arg1: i32, %arg2: i32) -> (i32, i32, i32, i32, i32) {
    %c0_i32 = arith.constant 0 : i32
    %c0_i32_0 = arith.constant 0 : i32
    %c0_i32_1 = arith.constant 0 : i32
    %c0_i32_2 = arith.constant 0 : i32
    return %arg0, %arg1, %c0_i32, %c0_i32_0, %c0_i32_1 : i32, i32, i32, i32, i32
  }
  func.func @transform_3(%arg0: i32, %arg1: i32, %arg2: i32) -> (i32, i32, i32, i32, i32) {
    %c0_i32 = arith.constant 0 : i32
    %c0_i32_0 = arith.constant 0 : i32
    %c0_i32_1 = arith.constant 0 : i32
    %c0_i32_2 = arith.constant 0 : i32
    return %arg0, %arg1, %c0_i32, %c0_i32_0, %c0_i32_1 : i32, i32, i32, i32, i32
  }
}

</mosaic_0001>

<bundles_post_ra>
// kernel: dice_loss.1
= control target key start
LH: loop header
LB: loop body
LE: loop exit
PB: predicated region body
PF: predicated region fallthrough
CT: control target
= control target key end

     0   :  { %s623_s12 = smov 0   ;;  %s625_s13 = smov 0   ;;  %s690_s0 = inlined_call_operand.vmem [shape: f32[2,4,2,128], index: 0, kind: input, shape index: {}]   ;;  %s691_s1 = inlined_call_operand.vmem [shape: f32[2,4,2,128], index: 1, kind: input, shape index: {}]   ;;  %s692_s2 = inlined_call_operand.vmem [shape: f32[2,1,4,2,128], index: 2, kind: output, shape index: {0}]   ;;  %s693_s3 = inlined_call_operand.vmem [shape: f32[2,1,4,2,128], index: 3, kind: output, shape index: {1}]  }
   0x1   :  { %s627_s14 = smov 0  }
   0x2 LB: > { %s33_s15 = sadd.s32 1, %s596_s13  ;;  %p530_p0 = scmp.ge.s32.totalorder %s600_s14, 1  ;;  %s600_s14 = sphi %s627_s14, %s14_s14   ;;  %s596_s13 = sphi %s625_s13, %s695_s13   ;;  %s592_s12 = sphi %s623_s12, %s694_s12  }
   0x3   : > { %p35_p1 = scmp.ge.s32.totalorder %s33_s15, 2  ;;  %p191_p2 = scmp.lt.s32.totalorder %s600_s14, 3 }
   0x5   : > { %s697_s15 = smov (%p35_p1, %s33_s15), 0  ;;  %p192_p3 = pnand %p530_p0, %p191_p2 }
   0x6   : > { %p242_p4 = scmp.lt.s32.totalorder (!%p192_p3), %s592_s12, 1  ;;  %v602_v0 = vmov (!%p192_p3), 0.0  }
   0x7   : > { %195 = sbr.rel (%p192_p3) target bundleno = 47 (0x2f), region = 28 }
   0xe   : > { %s699_s12 = smov (!%p242_p4, %s592_s12), 1 }
   0xf   : > { %s541_s16 = sshll.u32 %s699_s12, 3 }
  0x10   : > { %s644_s19 = scalar_lea.vmem %s692_s2, %s541_s16  ;;  %s649_s22 = scalar_lea.vmem %s693_s3, %s541_s16 }
  0x11   : > { %283 = vst [vmem:[%s644_s19] sm:$0x3] %v602_v0  ;;  %284 = vst [vmem:[%s644_s19 + $0x2] sm:$0x3] %v602_v0  ;;  %s249_s25 = scalar_lea.vmem %s690_s0, %s541_s16  ;;  %s259_s28 = scalar_lea.vmem %s691_s1, %s541_s16 }
  0x12   : > { %285 = vst [vmem:[%s644_s19 + $0x4] sm:$0x3] %v602_v0  ;;  %286 = vst [vmem:[%s644_s19 + $0x6] sm:$0x3] %v602_v0  ;;  %v291_v1 = vld [vmem:[%s249_s25] sm:$0x3] }
  0x13   : > { %287 = vst [vmem:[%s649_s22] sm:$0x3] %v602_v0  ;;  %288 = vst [vmem:[%s649_s22 + $0x2] sm:$0x3] %v602_v0  ;;  %v292_v2 = vld [vmem:[%s249_s25 + $0x2] sm:$0x3]  ;;  %v299_v3 = vmul.f32 0.5, %v291_v1 }
  0x14   : > { %289 = vst [vmem:[%s649_s22 + $0x4] sm:$0x3] %v602_v0  ;;  %290 = vst [vmem:[%s649_s22 + $0x6] sm:$0x3] %v602_v0  ;;  %v300_v4 = vmul.f32 0.5, %v292_v2 }
  0x15   : > { %v293_v5 = vld [vmem:[%s249_s25 + $0x4] sm:$0x3]  ;;  %v294_v7 = vld [vmem:[%s249_s25 + $0x6] sm:$0x3]  ;;  %570 = vtanh.f32 %v299_v3  ;;  %v295_v10 = vld [vmem:[%s259_s28] sm:$0x3] }
  0x16   : > { %v301_v6 = vmul.f32 0.5, %v293_v5  ;;  %v302_v8 = vmul.f32 0.5, %v294_v7  ;;  %572 = vtanh.f32 %v300_v4  ;;  %v296_v13 = vld [vmem:[%s259_s28 + $0x2] sm:$0x3]  ;;  %v297_v16 = vld [vmem:[%s259_s28 + $0x4] sm:$0x3]  ;;  %v323_v21 = vmul.f32 %v295_v10, %v295_v10 }
  0x17   : > { %v298_v20 = vld [vmem:[%s259_s28 + $0x6] sm:$0x3]  ;;  %v324_v25 = vmul.f32 %v296_v13, %v296_v13  ;;  %v325_v30 = vmul.f32 %v297_v16, %v297_v16 }
  0x18   : > { %574 = vtanh.f32 %v301_v6  ;;  %v331_v22 = vld [vmem:[%s644_s19] sm:$0x3]  ;;  %v332_v27 = vld [vmem:[%s644_s19 + $0x2] sm:$0x3]  ;;  %v326_v36 = vmul.f32 %v298_v20, %v298_v20 }
  0x19   : > { %576 = vtanh.f32 %v302_v8  ;;  %v333_v32 = vld [vmem:[%s644_s19 + $0x4] sm:$0x3]  ;;  %v334_v39 = vld [vmem:[%s644_s19 + $0x6] sm:$0x3] }
  0x1a   : > { %v347_v34 = vld [vmem:[%s649_s22] sm:$0x3]  ;;  %v348_v41 = vld [vmem:[%s649_s22 + $0x2] sm:$0x3] }
  0x1b   : > { %v349_v46 = vld [vmem:[%s649_s22 + $0x4] sm:$0x3]  ;;  %v350_v51 = vld [vmem:[%s649_s22 + $0x6] sm:$0x3] }
  0x1f   : > { %v571_v9 = vpop.eup %570 }
  0x20   : > { %v573_v11 = vpop.eup %572  ;;  %v307_v12 = vadd.f32 1.0, %v571_v9 }
  0x21   : > { %v308_v15 = vadd.f32 1.0, %v573_v11 }
  0x22   : > { %v575_v14 = vpop.eup %574  ;;  %v311_v18 = vmul.f32 0.5, %v307_v12 }
  0x23   : > { %v577_v17 = vpop.eup %576  ;;  %v309_v19 = vadd.f32 1.0, %v575_v14  ;;  %v312_v23 = vmul.f32 0.5, %v308_v15 }
  0x24   : > { %v310_v24 = vadd.f32 1.0, %v577_v17  ;;  %v315_v26 = vmul.f32 %v311_v18, %v295_v10  ;;  %v319_v29 = vmul.f32 %v311_v18, %v311_v18 }
  0x25   : > { %v313_v28 = vmul.f32 0.5, %v309_v19  ;;  %v316_v31 = vmul.f32 %v312_v23, %v296_v13  ;;  %v320_v35 = vmul.f32 %v312_v23, %v312_v23 }
  0x26   : > { %v314_v33 = vmul.f32 0.5, %v310_v24  ;;  %v339_v37 = vadd.f32 %v331_v22, %v315_v26  ;;  %v327_v40 = vadd.f32 %v323_v21, %v319_v29 }
  0x27   : > { %v317_v38 = vmul.f32 %v313_v28, %v297_v16  ;;  %v321_v42 = vmul.f32 %v313_v28, %v313_v28  ;;  %v340_v43 = vadd.f32 %v332_v27, %v316_v31  ;;  %v328_v45 = vadd.f32 %v324_v25, %v320_v35 }
  0x28   : > { %v318_v44 = vmul.f32 %v314_v33, %v298_v20  ;;  %v322_v47 = vmul.f32 %v314_v33, %v314_v33  ;;  %343 = vst [vmem:[%s644_s19] sm:$0x3] %v339_v37  ;;  %v355_v49 = vadd.f32 %v347_v34, %v327_v40 }
  0x29   : > { %v341_v48 = vadd.f32 %v333_v32, %v317_v38  ;;  %v329_v50 = vadd.f32 %v325_v30, %v321_v42  ;;  %344 = vst [vmem:[%s644_s19 + $0x2] sm:$0x3] %v340_v43  ;;  %v356_v53 = vadd.f32 %v348_v41, %v328_v45 }
  0x2a   : > { %v342_v52 = vadd.f32 %v334_v39, %v318_v44  ;;  %v330_v54 = vadd.f32 %v326_v36, %v322_v47  ;;  %359 = vst [vmem:[%s649_s22] sm:$0x3] %v355_v49 }
  0x2b   : > { %345 = vst [vmem:[%s644_s19 + $0x4] sm:$0x3] %v341_v48  ;;  %v357_v55 = vadd.f32 %v349_v46, %v329_v50  ;;  %360 = vst [vmem:[%s649_s22 + $0x2] sm:$0x3] %v356_v53 }
  0x2c   : > { %346 = vst [vmem:[%s644_s19 + $0x6] sm:$0x3] %v342_v52  ;;  %v358_v56 = vadd.f32 %v350_v51, %v330_v54 }
  0x2d   : > { %361 = vst [vmem:[%s649_s22 + $0x4] sm:$0x3] %v357_v55 }
  0x2e   : > { %362 = vst [vmem:[%s649_s22 + $0x6] sm:$0x3] %v358_v56 }
  0x2f PF: > { %s14_s14 = sadd.s32 1, %s600_s14   ;;  %s694_s12 = smov %s596_s13 }
  0x30   : > { %p11_p5 = scmp.ge.s32.totalorder %s14_s14, 4   ;;  %s695_s13 = smov %s697_s15 }
  0x32   :  { %13 = sbr.rel (!%p11_p5) target bundleno = 2 (0x2), region = 77 }

</bundles_post_ra>
